<compile_context>
chip_gen: v7x
topology: tpu7x:2x2x1
jax: 0.10.0
libtpu: 0.0.40
codegen_flags: <defaults>
</compile_context>

<pallas_src>
import functools

import jax
import jax.numpy as jnp
from jax.experimental import pallas as pl
from jax.experimental.pallas import tpu as pltpu


def _sin_act_kernel(scale_ref, shift_ref, x_ref, o_ref, *, compute_dtype):
    # scale_ref / shift_ref: (1,) f32 scalars, prefetched into SMEM.
    # x_ref / o_ref:         (tile_rows, lanes) VMEM tiles (last block may be partial).
    scale = scale_ref[0].astype(compute_dtype)
    shift = shift_ref[0].astype(compute_dtype)
    x = x_ref[...].astype(compute_dtype)
    # Exactly sub + mul (VPU) + sin (EUP/polynomial): matches the module semantics.
    o_ref[...] = jnp.sin((x - shift) * scale).astype(o_ref.dtype)


def _round_up(x, m):
    return ((x + m - 1) // m) * m


def sin_activation(
    x,
    scale,
    shift,
    *,
    target_block_bytes=4 << 20,   # ~4 MiB blocks: 2 refs x 2 bufs x 4 MiB = 16 MiB VMEM
    min_pallas_elements=1 << 14,  # below this, pallas_call launch overhead > compute
    compute_dtype=jnp.float32,    # keep f32 on v5e; bf16 is an option on v6e/v7x inputs
):
    """Applies sin((x - shift) * scale) elementwise via a Pallas TPU kernel.

    Works for any input shape/size. scale / shift are shape-(1,) parameters as
    in the PyTorch module.
    """
    orig_shape = x.shape
    orig_dtype = x.dtype
    total = x.size

    scale = jnp.asarray(scale, jnp.float32).reshape(1)
    shift = jnp.asarray(shift, jnp.float32).reshape(1)

    itemsize = jnp.dtype(orig_dtype).itemsize
    # Dtype-aware sublane granularity: packed dtypes need 16/32-row tiles.
    sublane = {4: 8, 2: 16, 1: 32}.get(itemsize, 8)

    # Tiny inputs: plain XLA sin is faster than a pallas_call launch.
    if total == 0 or total < max(min_pallas_elements, sublane * 128):
        return jnp.sin((x.astype(jnp.float32) - shift[0]) * scale[0]).astype(orig_dtype)

    # ---- Lane-dense 2-D view: (rows, lanes) with lanes % 128 == 0 ------------
    # Prefer the widest lane count that divides total exactly (no padding, no
    # extra HBM pass); among those, prefer rows >= sublane for full tiles.
    lanes = None
    for cand in (512, 256, 128):
        if total % cand == 0 and total // cand >= sublane:
            lanes = cand
            break
    if lanes is None:
        for cand in (512, 256, 128):
            if total % cand == 0:
                lanes = cand
                break

    flat = x.reshape(-1)
    padded = False
    if lanes is None:
        # Rare fallback: no lane width divides total -> pad to a multiple of
        # 128 (one extra HBM pass) and slice the result afterwards.
        lanes = 128
        padded_total = _round_up(total, lanes)
        flat = jnp.pad(flat, (0, padded_total - total))
        padded = True
    rows = flat.size // lanes
    x2d = flat.reshape(rows, lanes)

    # ---- Row tiling: near-equal blocks, even step count for v7x's 2 TCs ------
    max_tile_rows = max(
        sublane, (target_block_bytes // (lanes * itemsize)) // sublane * sublane
    )
    steps = pl.cdiv(rows, max_tile_rows)
    if steps > 1:
        steps = _round_up(steps, 2)                      # balance across 2 TensorCores
        tile_rows = _round_up(pl.cdiv(rows, steps), sublane)
    else:
        tile_rows = rows                                 # single full-array block
    grid_steps = pl.cdiv(rows, tile_rows)                # Pallas masks the partial last block

    kernel = functools.partial(_sin_act_kernel, compute_dtype=compute_dtype)

    out2d = pl.pallas_call(
        kernel,
        out_shape=jax.ShapeDtypeStruct((rows, lanes), orig_dtype),
        grid_spec=pltpu.PrefetchScalarGridSpec(
            num_scalar_prefetch=2,                       # scale, shift -> SMEM
            grid=(grid_steps,),
            in_specs=[pl.BlockSpec((tile_rows, lanes), lambda i, *_: (i, 0))],
            out_specs=pl.BlockSpec((tile_rows, lanes), lambda i, *_: (i, 0)),
        ),
        compiler_params=pltpu.CompilerParams(
            dimension_semantics=("parallel",),
            vmem_limit_bytes=32 << 20,
        ),
    )(scale, shift, x2d)

    out_flat = out2d.reshape(-1)
    if padded:
        out_flat = out_flat[:total]
    return out_flat.reshape(orig_shape)


if __name__ == "__main__":
    key = jax.random.PRNGKey(0)
    k1, k2, k3 = jax.random.split(key, 3)

    # Deterministic parameter init exactly as the module's __init__:
    #   scale = ones(1), shift = zeros(1), y_shift = zeros(1) (unused in forward)
    scale = jnp.ones((1,), dtype=jnp.float32)
    shift = jnp.zeros((1,), dtype=jnp.float32)
    y_shift = jnp.zeros((1,), dtype=jnp.float32)  # not used by forward (kept for parity)

    # 1) Small NCHW input (2,4,16,16), forced through the Pallas path.
    x_small = jax.random.normal(k1, (2, 4, 16, 16), dtype=jnp.float32)
    out_small = jax.block_until_ready(
        sin_activation(x_small, scale, shift, min_pallas_elements=0)
    )
    ref_small = jnp.sin((x_small - shift[0]) * scale[0])
    assert out_small.shape == x_small.shape and out_small.dtype == x_small.dtype
    assert jnp.max(jnp.abs(out_small - ref_small)) < 1e-5

    # Non-trivial scale/shift to verify the SMEM scalar-prefetch handling.
    scale_nt = jnp.array([1.7], dtype=jnp.float32)
    shift_nt = jnp.array([-0.3], dtype=jnp.float32)
    out_nt = jax.block_until_ready(
        sin_activation(x_small, scale_nt, shift_nt, min_pallas_elements=0)
    )
    ref_nt = jnp.sin((x_small - shift_nt[0]) * scale_nt[0])
    assert jnp.max(jnp.abs(out_nt - ref_nt)) < 1e-5

    # 2) Larger input whose size is divisible by 512: copy-free path (no pad,
    #    no slice), lane-dense ~2 MiB blocks, even 2-step "parallel" grid.
    x_big = jax.random.normal(k2, (8, 32, 64, 65), dtype=jnp.float32)
    out_big = jax.block_until_ready(sin_activation(x_big, scale_nt, shift_nt))
    ref_big = jnp.sin((x_big - shift_nt[0]) * scale_nt[0])
    assert out_big.shape == x_big.shape and out_big.dtype == x_big.dtype
    assert jnp.max(jnp.abs(out_big - ref_big)) < 1e-5

    # 3) Awkward size not divisible by 128: exercises the rare pad fallback.
    x_odd = jax.random.normal(k3, (3, 5, 7, 11), dtype=jnp.float32)
    out_odd = jax.block_until_ready(
        sin_activation(x_odd, scale_nt, shift_nt, min_pallas_elements=0)
    )
    ref_odd = jnp.sin((x_odd - shift_nt[0]) * scale_nt[0])
    assert out_odd.shape == x_odd.shape and out_odd.dtype == x_odd.dtype
    assert jnp.max(jnp.abs(out_odd - ref_odd)) < 1e-5

    print("KERNEL_OK")
</pallas_src>

<mosaic_0001>
module attributes {stable_mosaic.version = 11 : i64} {
  func.func @_sin_act_kernel(%arg0: i32, %arg1: memref<1xf32, #tpu.memory_space<smem>>, %arg2: memref<1xf32, #tpu.memory_space<smem>>, %arg3: memref<8x256xf32, #tpu.memory_space<vmem>>, %arg4: memref<8x256xf32, #tpu.memory_space<vmem>>) attributes {dimension_semantics = [#tpu.dimension_semantics<parallel>], iteration_bounds = array<i64: 1>, scalar_prefetch = 2 : i64, scratch_operands = 0 : i64, tpu.core_type = #tpu.core_type<tc>, window_params = [{transform_indices = @transform_0, window_bounds = array<i64: 8, 256>}, {transform_indices = @transform_1, window_bounds = array<i64: 8, 256>}]} {
    %c0 = arith.constant 0 : index
    %0 = memref.load %arg1[%c0] : memref<1xf32, #tpu.memory_space<smem>>
    %c0_0 = arith.constant 0 : index
    %1 = memref.load %arg2[%c0_0] : memref<1xf32, #tpu.memory_space<smem>>
    %c0_1 = arith.constant 0 : index
    %c0_2 = arith.constant 0 : index
    %2 = vector.load %arg3[%c0_1, %c0_2] : memref<8x256xf32, #tpu.memory_space<vmem>>, vector<8x256xf32>
    %3 = vector.broadcast %1 : f32 to vector<8x256xf32>
    %4 = arith.subf %2, %3 : vector<8x256xf32>
    %5 = vector.broadcast %0 : f32 to vector<8x256xf32>
    %6 = arith.mulf %4, %5 : vector<8x256xf32>
    %7 = math.sin %6 : vector<8x256xf32>
    %c0_3 = arith.constant 0 : index
    %c0_4 = arith.constant 0 : index
    %8 = vector.load %arg4[%c0_3, %c0_4] : memref<8x256xf32, #tpu.memory_space<vmem>>, vector<8x256xf32>
    tpu.vector_store %arg4[%c0_3, %c0_4], %7 {strides = array<i32>} : memref<8x256xf32, #tpu.memory_space<vmem>>, vector<8x256xf32>,
    return
  }
  func.func @transform_0(%arg0: i32, %arg1: memref<1xf32, #tpu.memory_space<smem>>, %arg2: memref<1xf32, #tpu.memory_space<smem>>) -> (i32, i32) {
    %c0_i32 = arith.constant 0 : i32
    %c0_i32_0 = arith.constant 0 : i32
    return %arg0, %c0_i32 : i32, i32
  }
  func.func @transform_1(%arg0: i32, %arg1: memref<1xf32, #tpu.memory_space<smem>>, %arg2: memref<1xf32, #tpu.memory_space<smem>>) -> (i32, i32) {
    %c0_i32 = arith.constant 0 : i32
    %c0_i32_0 = arith.constant 0 : i32
    return %arg0, %c0_i32 : i32, i32
  }
}

</mosaic_0001>

<bundles_post_ra>
// kernel: tpu_custom_call.1
= control target key start
LH: loop header
LB: loop body
LE: loop exit
PB: predicated region body
PF: predicated region fallthrough
CT: control target
= control target key end

     0   :  { %10 = vsyncpa [#allocation6], 0  ;;  %s468_s0 = inlined_call_operand.<no memory space> [shape: f32[1], index: 0, kind: input, shape index: {}]   ;;  %s469_s1 = inlined_call_operand.<no memory space> [shape: f32[1], index: 1, kind: input, shape index: {}]   ;;  %s470_s2 = inlined_call_operand.hbm [shape: f32[8,256], index: 2, kind: input, shape index: {}]   ;;  %s471_s3 = inlined_call_operand.hbm [shape: f32[8,256], index: 3, kind: output, shape index: {}]  }
   0x1   :  { %11 = vsyncpa [#allocation7], 0  ;;  %s340_s12 = smov [#allocation5]   ;;  %s292_s16 = scalar_lea.hbm %s470_s2, 256 }
   0x2   :  { %s18_s13 = sshll.u32 %s340_s12, 4  ;;  %p293_p0 = scmp.ne.s32.totalorder %s470_s2, %s292_s16  ;;  %s19_s13 = int_to_ptr.vmem [resolvable:$true] %s18_s13 }
   0x3   :  { %p296_p1 = scmp.lt.u32.totalorder %s292_s16, %s470_s2 }
   0x5   :  { %p298_p2 = pnand %p296_p1, %p293_p0 }
   0x7   :  { %301 = shalt.err (!%p298_p2)
}
   0x8   :  { %s302_s21 = scalar_lea.vmem %s19_s13, 256  ;;  %p307_p4 = scmp.lt.s32.totalorder %s19_s13, %s19_s13 }
   0x9   :  { %p303_p3 = scmp.ne.s32.totalorder %s19_s13, %s302_s21  ;;  %p308_p5 = scmp.lt.s32.totalorder %s302_s21, %s302_s21 }
   0xb   :  { %p309_p6 = por %p308_p5, %p307_p4 }
   0xd   :  { %p310_p7 = pnand %p309_p6, %p303_p3 }
   0xf   :  { %313 = shalt.err (!%p310_p7)
}
  0x10   :  { %21 = dma.hbm_to_vmem [thread:$0]  %s470_s2, 256, %s19_s13, [#allocation6]  }
  0x11   :  { %336 = dma.done.wait [#allocation6], 256  }
  0x12   :  { %337 = vsyncadd [#allocation6], 4294967040  ;;  %v29_v0 = vstv %s469_s1  ;;  %v27_v1 = vld [vmem:[#allocation5] sm:$0xff]  ;;  %v32_v2 = vstv %s468_s0  ;;  %v28_v3 = vld [vmem:[#allocation5 + $0x8] sm:$0xff]  ;;  %v341_v30 = vmov 683565275  }
  0x13   :  { %v30_v4 = vsub.f32 %v27_v1, %v29_v0  ;;  %v31_v5 = vsub.f32 %v28_v3, %v29_v0  ;;  %v342_v32 = vmov 2475754826   ;;  %v343_v34 = vmov 2131351028   ;;  %s347_s0 = smov [#allocation8]  }
  0x14   :  { %v344_v36 = vmov 2102212464   ;;  %v345_v38 = vmov 920167782   ;;  %v346_v46 = vmov 1326507024  }
  0x15   :  { %v386_v6 = vmul.f32 %v32_v2, %v30_v4  ;;  %v388_v7 = vmul.f32 %v32_v2, %v31_v5  ;;  %s251_s1 = sshll.u32 %s347_s0, 4  ;;  %s252_s1 = int_to_ptr.vmem [resolvable:$true] %s251_s1 }
  0x16   :  { %s314_s2 = scalar_lea.vmem %s252_s1, 256  ;;  %p319_p9 = scmp.lt.s32.totalorder %s252_s1, %s252_s1 }
  0x17   :  { %v35_v8 = vand.u32 2147483647, %v386_v6  ;;  %v38_v9 = vand.u32 2139095040, %v386_v6  ;;  %v139_v10 = vand.u32 2147483647, %v388_v7  ;;  %v142_v11 = vand.u32 2139095040, %v388_v7  ;;  %p315_p8 = scmp.ne.s32.totalorder %s252_s1, %s314_s2  ;;  %p320_p10 = scmp.lt.s32.totalorder %s314_s2, %s314_s2 }
  0x18   :  { %vm37_vm14 = vcmp.lt.s32.totalorder %v386_v6, 0 }
  0x19   :  { %v39_v12 = vshrl.u32 %v38_v9, 23  ;;  %v42_v13 = vand.u32 8388607, %v35_v8  ;;  %v143_v14 = vshrl.u32 %v142_v11, 23  ;;  %v146_v15 = vand.u32 8388607, %v139_v10  ;;  %p321_p11 = por %p320_p10, %p319_p9 }
  0x1a   :  { %vm36_vm15 = vcmp.le.f32.partialorder %v35_v8, 0.7853982 }
  0x1b   :  { %v260_v16 = vadd.s32 4294967169, %v39_v12  ;;  %v264_v17 = vadd.s32 4294967169, %v143_v14  ;;  %v43_v19 = vor.u32 8388608, %v42_v13  ;;  %v147_v20 = vor.u32 8388608, %v146_v15  ;;  %p322_p12 = pnand %p321_p11, %p315_p8 }
  0x1d   :  { %v45_v18 = vadd.s32 1, %v260_v16  ;;  %v149_v21 = vadd.s32 1, %v264_v17  ;;  %v398_v26 = vshll.u32 %v43_v19, 8  ;;  %v400_v28 = vshll.u32 %v147_v20, 8 }
  0x1f   :  { %vm46_vm0 = vcmp.gt.s32.totalorder %v45_v18, 0  ;;  %vm150_vm1 = vcmp.gt.s32.totalorder %v149_v21, 0 }
  0x20   :  { %v47_v22 = vsel %vm46_vm0, %v45_v18, 0  ;;  %v151_v25 = vsel %vm150_vm1, %v149_v21, 0  ;;  %vm141_vm0 = vcmp.lt.s32.totalorder %v388_v7, 0  ;;  %vm140_vm1 = vcmp.le.f32.partialorder %v139_v10, 0.7853982 }
  0x21   :  { %v48_v23 = vshrl.u32 %v47_v22, 5  ;;  %v49_v24 = vand.u32 31, %v47_v22  ;;  %v153_v27 = vand.u32 31, %v151_v25  ;;  %v402_v40 = vshrl.u32 %v151_v25, 5 }
  0x23   :  { %v50_v29 = vsub.s32 32, %v49_v24  ;;  %v52_v31 = vshll.u32 %v341_v30, %v49_v24  ;;  %v55_v33 = vshll.u32 %v342_v32, %v49_v24  ;;  %v58_v35 = vshll.u32 %v343_v34, %v49_v24 }
  0x24   :  { %v61_v37 = vshll.u32 %v344_v36, %v49_v24  ;;  %v64_v39 = vshll.u32 %v345_v38, %v49_v24  ;;  %vm67_vm2 = vcmp.lt.s32.totalorder %v48_v23, 1  ;;  %vm68_vm3 = vcmp.lt.s32.totalorder %v48_v23, 2 }
  0x25   :  { %v51_v41 = vshrl.u32 %v341_v30, %v50_v29  ;;  %v53_v42 = vshrl.u32 %v342_v32, %v50_v29  ;;  %v56_v43 = vshrl.u32 %v343_v34, %v50_v29  ;;  %v59_v44 = vshrl.u32 %v344_v36, %v50_v29 }
  0x26   :  { %v62_v45 = vshrl.u32 %v345_v38, %v50_v29  ;;  %v65_v47 = vshrl.u32 %v346_v46, %v50_v29  ;;  %vm70_vm4 = vcmp.lt.s32.totalorder %v48_v23, 4  ;;  %v154_v51 = vsub.s32 32, %v153_v27 }
  0x27   :  { %v54_v48 = vor.u32 %v53_v42, %v52_v31  ;;  %v57_v49 = vor.u32 %v56_v43, %v55_v33  ;;  %v60_v50 = vor.u32 %v59_v44, %v58_v35  ;;  %vm69_vm5 = vcmp.lt.s32.totalorder %v48_v23, 3 }
  0x28   :  { %v63_v52 = vor.u32 %v62_v45, %v61_v37  ;;  %v66_v53 = vor.u32 %v65_v47, %v64_v39  ;;  %v156_v54 = vshll.u32 %v341_v30, %v153_v27  ;;  %v159_v62 = vshll.u32 %v342_v32, %v153_v27 }
  0x29   :  { %v71_v55 = vsel %vm67_vm2, %v51_v41, %v54_v48  ;;  %v72_v56 = vsel %vm70_vm4, %v60_v50, 2102212464  ;;  %v75_v57 = vsel %vm67_vm2, %v54_v48, %v57_v49  ;;  %v79_v58 = vsel %vm67_vm2, %v57_v49, %v60_v50 }
  0x2a   :  { %v73_v59 = vsel %vm69_vm5, %v57_v49, %v72_v56  ;;  %v76_v60 = vsel %vm70_vm4, %v63_v52, 920167782  ;;  %v80_v61 = vsel %vm70_vm4, %v66_v53, 1326507024  ;;  %v155_v1 = vshrl.u32 %v341_v30, %v154_v51 }
  0x2b   :  { %v77_v63 = vsel %vm69_vm5, %v60_v50, %v76_v60  ;;  %v81_v0 = vsel %vm69_vm5, %v63_v52, %v80_v61  ;;  %v157_v2 = vshrl.u32 %v342_v32, %v154_v51  ;;  %v74_v3 = vsel %vm68_vm3, %v71_v55, %v73_v59 }
  0x2c   :  { %v78_v4 = vsel %vm68_vm3, %v75_v57, %v77_v63  ;;  %v82_v5 = vsel %vm68_vm3, %v79_v58, %v81_v0  ;;  %v160_v9 = vshrl.u32 %v343_v34, %v154_v51  ;;  %v162_v17 = vshll.u32 %v343_v34, %v153_v27 }
  0x2d   :  { %v411_v11 = vmul.u32.u64.low %v398_v26, %v82_v5  ;;  %v412_v12 = vmul.u32.u64.high %v398_v26, %v82_v5, %v411_v11  ;;  %v415_v13 = vmul.u32.u64.low %v398_v26, %v78_v4  ;;  %v416_v14 = vmul.u32.u64.high %v398_v26, %v78_v4, %v415_v13 }
  0x2e   :  { %v158_v15 = vor.u32 %v157_v2, %v156_v54  ;;  %v161_v16 = vor.u32 %v160_v9, %v159_v62  ;;  %v163_v18 = vshrl.u32 %v344_v36, %v154_v51  ;;  %v165_v19 = vshll.u32 %v344_v36, %v153_v27 }
  0x2f   :  { %v166_v20 = vshrl.u32 %v345_v38, %v154_v51  ;;  %v168_v21 = vshll.u32 %v345_v38, %v153_v27  ;;  %v169_v22 = vshrl.u32 %v346_v46, %v154_v51  ;;  %v90_v23 = vmul.u32 %v398_v26, %v74_v3 }
  0x30   :  { %v164_v24 = vor.u32 %v163_v18, %v162_v17  ;;  %vm171_vm6 = vcmp.lt.s32.totalorder %v402_v40, 1  ;;  %vm172_vm7 = vcmp.lt.s32.totalorder %v402_v40, 2  ;;  %vm92_vm8 = vc.u32 %v412_v12, %v415_v13 }
  0x31   :  { %v93_v25 = vadd.s32 1, %v416_v14  ;;  %v167_v29 = vor.u32 %v166_v20, %v165_v19  ;;  %vm173_vm9 = vcmp.lt.s32.totalorder %v402_v40, 3  ;;  %v170_v30 = vor.u32 %v169_v22, %v168_v21 }
  0x32   :  { %vm174_vm10 = vcmp.lt.s32.totalorder %v402_v40, 4  ;;  %v175_v31 = vsel %vm171_vm6, %v155_v1, %v158_v15  ;;  %v179_v27 = vsel %vm171_vm6, %v158_v15, %v161_v16  ;;  %v183_v34 = vsel %vm171_vm6, %v161_v16, %v164_v24 }
  0x33   :  { %v94_v32 = vsel %vm92_vm8, %v93_v25, %v416_v14  ;;  %v176_v26 = vsel %vm174_vm10, %v164_v24, 2102212464  ;;  %v180_v33 = vsel %vm174_vm10, %v167_v29, 920167782  ;;  %v184_v38 = vsel %vm174_vm10, %v170_v30, 1326507024 }
  0x34   :  { %v95_v35 = vadd.s32 %v94_v32, %v90_v23  ;;  %v177_v36 = vsel %vm173_vm9, %v161_v16, %v176_v26  ;;  %v181_v37 = vsel %vm173_vm9, %v164_v24, %v180_v33  ;;  %v185_v42 = vsel %vm173_vm9, %v167_v29, %v184_v38 }
  0x35   :  { %v178_v39 = vsel %vm172_vm7, %v175_v31, %v177_v36  ;;  %v182_v41 = vsel %vm172_vm7, %v179_v27, %v181_v37  ;;  %v186_v44 = vsel %vm172_vm7, %v183_v34, %v185_v42  ;;  %v91_v63 = vadd.s32 %v415_v13, %v412_v12 }
  0x36   :  { %v96_v43 = vadd.s32 536870912, %v95_v35  ;;  %v433_v45 = vmul.u32.u64.low %v400_v28, %v182_v41  ;;  %v434_v46 = vmul.u32.u64.high %v400_v28, %v182_v41, %v433_v45  ;;  %v194_v50 = vmul.u32 %v400_v28, %v178_v39 }
  0x37   :  { %v437_v47 = vmul.u32.u64.low %v400_v28, %v186_v44  ;;  %v438_v48 = vmul.u32.u64.high %v400_v28, %v186_v44, %v437_v47  ;;  %vm127_vm5 = vweird.f32 %v386_v6  ;;  %vm231_vm9 = vweird.f32 %v388_v7 }
  0x38   :  { %v97_v49 = vshrl.u32 %v96_v43, 30  ;;  %v197_v52 = vadd.s32 1, %v434_v46 }
  0x39   :  { %vm196_vm11 = vc.u32 %v438_v48, %v433_v45  ;;  %v195_v19 = vadd.s32 %v433_v45, %v438_v48 }
  0x3a   :  { %v98_v51 = vshll.u32 %v97_v49, 30  ;;  %v198_v40 = vsel %vm196_vm11, %v197_v52, %v434_v46  ;;  %v121_v12 = vsub.s32 4, %v97_v49 }
  0x3b   :  { %v199_v54 = vadd.s32 %v198_v40, %v194_v50 }
  0x3c   :  { %v99_v53 = vsub.s32 %v95_v35, %v98_v51  ;;  %v122_v31 = vsel %vm37_vm14, %v121_v12, %v97_v49 }
  0x3d   :  { %v200_v56 = vadd.s32 536870912, %v199_v54  ;;  %v124_v34 = vsel %vm36_vm15, 0, %v122_v31 }
  0x3e   :  { %v101_v55 = vsub.s32 0, %v99_v53  ;;  %v128_v39 = vadd.s32 3, %v124_v34 }
  0x3f   :  { %v201_v58 = vshrl.u32 %v200_v56, 30 }
  0x40   :  { %v261_v57 = vmin.u32 %v101_v55, %v99_v53  ;;  %v129_v43 = vand.u32 3, %v128_v39 }
  0x41   :  { %v202_v60 = vshll.u32 %v201_v58, 30  ;;  %v225_v38 = vsub.s32 4, %v201_v58 }
  0x42   :  { %v103_v59 = vclz %v261_v57  ;;  %vm134_vm2 = vcmp.eq.s32.totalorder %v129_v43, 2  ;;  %vm131_vm3 = vcmp.eq.s32.totalorder %v129_v43, 0  ;;  %vm130_vm4 = vcmp.lt.s32.totalorder %v129_v43, 2 }
  0x43   :  { %v203_v62 = vsub.s32 %v199_v54, %v202_v60  ;;  %v226_v42 = vsel %vm141_vm0, %v225_v38, %v201_v58 }
  0x44   :  { %v262_v61 = vadd.s32 4294967294, %v103_v59  ;;  %v228_v46 = vsel %vm140_vm1, 0, %v226_v42 }
  0x45   :  { %v205_v0 = vsub.s32 0, %v203_v62  ;;  %v232_v50 = vadd.s32 3, %v228_v46 }
  0x46   :  { %vm263_vm12 = vcmp.lt.s32.totalorder %v262_v61, 0 }
  0x47   :  { %v106_v28 = vsel %vm263_vm12, 0, %v262_v61  ;;  %v265_v4 = vmin.u32 %v205_v0, %v203_v62  ;;  %v233_v40 = vand.u32 3, %v232_v50 }
  0x48   :  { %v107_v1 = vsub.s32 32, %v106_v28  ;;  %v108_v2 = vshll.u32 %v99_v53, %v106_v28  ;;  %v111_v3 = vsub.s32 4294967266, %v106_v28 }
  0x49   :  { %v207_v11 = vclz %v265_v4  ;;  %vm238_vm6 = vcmp.eq.s32.totalorder %v233_v40, 2  ;;  %vm235_vm7 = vcmp.eq.s32.totalorder %v233_v40, 0  ;;  %vm234_vm8 = vcmp.lt.s32.totalorder %v233_v40, 2 }
  0x4a   :  { %v109_v5 = vshrl.u32 %v91_v63, %v107_v1  ;;  %v112_v9 = vadd.s32 127, %v111_v3 }
  0x4b   :  { %v266_v16 = vadd.s32 4294967294, %v207_v11 }
  0x4c   :  { %v110_v14 = vor.u32 %v109_v5, %v108_v2  ;;  %v113_v15 = vshll.u32 %v112_v9, 23 }
  0x4d   :  { %vm267_vm13 = vcmp.lt.s32.totalorder %v266_v16, 0 }
  0x4e   :  { %v114_v17 = vor.u32 4788187, %v113_v15  ;;  %v117_v18 = vcvt.s32.f32 %v110_v14  ;;  %v210_v13 = vsel %vm267_vm13, 0, %v266_v16 }
  0x4f   :  { %v211_v21 = vsub.s32 32, %v210_v13  ;;  %v212_v22 = vshll.u32 %v203_v62, %v210_v13  ;;  %v215_v23 = vsub.s32 4294967266, %v210_v13 }
  0x50   :  { %v115_v20 = vand.u32 2147483647, %v114_v17 }
  0x51   :  { %v213_v25 = vshrl.u32 %v195_v19, %v211_v21  ;;  %v216_v29 = vadd.s32 127, %v215_v23 }
  0x52   :  { %v118_v24 = vmul.f32 %v117_v18, %v115_v20 }
  0x53   :  { %v214_v27 = vor.u32 %v213_v25, %v212_v22  ;;  %v217_v32 = vshll.u32 %v216_v29, 23 }
  0x54   :  { %v119_v30 = vxor.u32 2147483648, %v118_v24 }
  0x55   :  { %v218_v35 = vor.u32 4788187, %v217_v32  ;;  %v221_v36 = vcvt.s32.f32 %v214_v27 }
  0x56   :  { %v120_v26 = vsel %vm37_vm14, %v119_v30, %v118_v24 }
  0x57   :  { %v123_v33 = vsel %vm36_vm15, %v386_v6, %v120_v26  ;;  %v219_v37 = vand.u32 2147483647, %v218_v35 }
  0x58   :  { %284 = vcosq.f32 %v123_v33 }
  0x59   :  { %286 = vsinq.f32 %v123_v33  ;;  %v222_v41 = vmul.f32 %v221_v36, %v219_v37 }
  0x5b   :  { %v223_v8 = vxor.u32 2147483648, %v222_v41 }
  0x5d   :  { %v224_v44 = vsel %vm141_vm0, %v223_v8, %v222_v41 }
  0x5e   :  { %v227_v45 = vsel %vm140_vm1, %v388_v7, %v224_v44 }
  0x5f   :  { %288 = vcosq.f32 %v227_v45 }
  0x60   :  { %290 = vsinq.f32 %v227_v45 }
  0x62   :  { %v285_v47 = vpop.eup %284 }
  0x63   :  { %v287_v48 = vpop.eup %286  ;;  %v135_v49 = vxor.u32 2147483648, %v285_v47 }
  0x64   :  { %v132_v51 = vxor.u32 2147483648, %v287_v48 }
  0x65   :  { %v136_v10 = vsel %vm134_vm2, %v135_v49, %v287_v48 }
  0x66   :  { %v133_v52 = vsel %vm131_vm3, %v285_v47, %v132_v51 }
  0x67   :  { %v137_v53 = vsel %vm130_vm4, %v133_v52, %v136_v10 }
  0x68   :  { %v138_v54 = vsel %vm127_vm5, nan, %v137_v53 }
  0x69   :  { %243 = vst [vmem:[#allocation8] sm:$0xff] %v138_v54  ;;  %v289_v55 = vpop.eup %288 }
  0x6a   :  { %v291_v56 = vpop.eup %290  ;;  %v239_v57 = vxor.u32 2147483648, %v289_v55 }
  0x6b   :  { %v236_v58 = vxor.u32 2147483648, %v291_v56 }
  0x6c   :  { %v240_v59 = vsel %vm238_vm6, %v239_v57, %v291_v56 }
  0x6d   :  { %v237_v60 = vsel %vm235_vm7, %v289_v55, %v236_v58 }
  0x6e   :  { %v241_v6 = vsel %vm234_vm8, %v237_v60, %v240_v59 }
  0x6f   :  { %v242_v61 = vsel %vm231_vm9, nan, %v241_v6 }
  0x70   :  { %244 = vst [vmem:[#allocation8 + $0x8] sm:$0xff] %v242_v61 }
  0x71   :  { %325 = shalt.err (!%p322_p12)
}
  0x72   :  { %s326_s30 = scalar_lea.hbm %s471_s3, 256 }
  0x73   :  { %p327_p13 = scmp.ne.s32.totalorder %s471_s3, %s326_s30  ;;  %p330_p0 = scmp.lt.u32.totalorder %s326_s30, %s471_s3 }
  0x75   :  { %p332_p1 = pnand %p330_p0, %p327_p13 }
  0x77   :  { %335 = shalt.err (!%p332_p1)
}
  0x78   :  { %254 = dma.vmem_to_hbm [thread:$0]  %s252_s1, 256, %s471_s3, [#allocation7]  }
  0x79   :  { %338 = dma.done.wait [#allocation7], 256  }
  0x7a   :  { %339 = vsyncadd [#allocation7], 4294967040 }
  0x7b   :  { %258 = vsyncpa [#allocation6], 1 }
  0x7c   :  { %259 = vsyncpa [#allocation7], 1 }

</bundles_post_ra>
